<compile_context>
chip_gen: v7x
topology: tpu7x:2x2x1
jax: 0.10.0
libtpu: 0.0.40
codegen_flags: <defaults>
</compile_context>

<pallas_src>
import math
import functools
import numpy as np

import jax
import jax.numpy as jnp
from jax.experimental import pallas as pl
from jax.experimental.pallas import tpu as pltpu


_EPS = 1e-7
_BCE_CLIP = float(np.log((1.0 - _EPS) / _EPS))   # logit clip equiv. to p in [eps, 1-eps]


def _round_up(v, m):
    return (v + m - 1) // m * m


def _choose_tiles(hw, per_lane_bytes, vmem_budget=16 * 1024 * 1024, max_tile=512):
    """Lane tile (multiple of 128) sized so double-buffered blocks fit the VMEM
    budget, capped so the 'parallel' grid has >= 2 steps whenever HW spans >= 2
    lane groups (keeps both v7x TensorCores busy)."""
    hwp = _round_up(hw, 128)
    n128 = hwp // 128
    cap = vmem_budget // max(2 * per_lane_bytes, 1)
    tile = max(128, min(max_tile, (cap // 128) * 128))
    if n128 >= 2:
        tile = min(tile, (n128 // 2) * 128)
    hwp = _round_up(hwp, tile)
    return tile, hwp


def _softplus(v):
    # log(1 + exp(v)), numerically stable.
    return jnp.maximum(v, 0.0) + jnp.log(1.0 + jnp.exp(-jnp.abs(v)))


def _sigmoid(v):
    # One EUP push (tanh) instead of exp + reciprocal.
    return 0.5 * jnp.tanh(0.5 * v) + 0.5


def _bce_logit(z, t):
    # BCE(clip(sigmoid(z)), t) computed in logit space: clamp z to +/-_BCE_CLIP
    # (equivalent to clipping the probability to [eps, 1-eps] like the torch ref)
    # then softplus(z) - t*z.
    zc = jnp.clip(z, -_BCE_CLIP, _BCE_CLIP)
    return _softplus(zc) - t * zc


# ----------------------------------------------------------------------------
# Inference (targets is None): decode boxes.
# ----------------------------------------------------------------------------
def _decode_kernel(pred_ref, anc_ref, out_ref, *, in_w, stride_w, stride_h,
                   num_classes):
    n, t = out_ref.shape[1], out_ref.shape[2]
    base = pl.program_id(0) * t
    cell = (base + jax.lax.broadcasted_iota(jnp.int32, (n, t), 1)).astype(jnp.float32)
    # floor((cell + 0.5) * (1/in_w)): the +0.5 keeps the product strictly off
    # integer boundaries so the VALU multiply-by-reciprocal never mis-floors
    # (no EUP divide needed).
    gy = jnp.floor((cell + 0.5) * (1.0 / in_w))
    gx = cell - gy * float(in_w)

    # Direct slab stores -- no concatenate temp.
    out_ref[0] = (_sigmoid(pred_ref[0]) + gx) * stride_w
    out_ref[1] = (_sigmoid(pred_ref[1]) + gy) * stride_h
    out_ref[2] = jnp.exp(pred_ref[2]) * anc_ref[0]   # anchors pre-scaled by stride
    out_ref[3] = jnp.exp(pred_ref[3]) * anc_ref[1]
    out_ref[4] = _sigmoid(pred_ref[4])
    for c in range(num_classes):                      # per-channel: bounded vregs
        out_ref[5 + c] = _sigmoid(pred_ref[5 + c])


# ----------------------------------------------------------------------------
# Training (targets given): masked BCE/MSE partial sums per HW tile.
# tgt_ref channels: [obj, noobj, tx, ty, tw, th, box_loss_scale, class_id]
# ----------------------------------------------------------------------------
def _loss_kernel(pred_ref, tgt_ref, out_ref, *, num_classes):
    mask = tgt_ref[0]
    noobj = tgt_ref[1]
    tx, ty = tgt_ref[2], tgt_ref[3]
    tw, th = tgt_ref[4], tgt_ref[5]
    bls = tgt_ref[6]
    cls_id = tgt_ref[7]
    mb = mask * bls

    px, py = pred_ref[0], pred_ref[1]
    pw, ph = pred_ref[2], pred_ref[3]
    pc = jnp.clip(pred_ref[4], -_BCE_CLIP, _BCE_CLIP)
    sp_c = _softplus(pc)

    # Direct per-row stores of the sublane-reduced partials (lane-dense output).
    out_ref[0, :] = jnp.sum(mb * _bce_logit(px, tx), axis=0)        # loss_x * n_obj
    out_ref[1, :] = jnp.sum(mb * _bce_logit(py, ty), axis=0)        # loss_y * n_obj
    out_ref[2, :] = jnp.sum(mb * (pw - tw) ** 2, axis=0)            # loss_w * n_obj
    out_ref[3, :] = jnp.sum(mb * (ph - th) ** 2, axis=0)            # loss_h * n_obj
    out_ref[4, :] = jnp.sum(mask * (sp_c - pc), axis=0)             # BCE(conf, 1) obj
    out_ref[5, :] = jnp.sum(noobj * sp_c, axis=0)                   # BCE(conf, 0) noobj

    # Class BCE: one-hot gather replaced by compare-against-class-id; unrolled
    # per-class accumulation into a single (N,T) f32 accumulator (no (C,N,T) temp,
    # no dense tcls DMA).
    acc = jnp.zeros(px.shape, jnp.float32)
    for c in range(num_classes):
        zc = jnp.clip(pred_ref[5 + c], -_BCE_CLIP, _BCE_CLIP)
        hit = (cls_id == float(c)).astype(jnp.float32)
        acc = acc + (_softplus(zc) - hit * zc)
    out_ref[6, :] = jnp.sum(mask * acc, axis=0)


# ----------------------------------------------------------------------------
# get_target: data-dependent scalar scatter over a ragged target list.
# TODO(synk): ragged per-image box->grid scatter with data-dependent argmax has
#             no clean Pallas equivalent; kept as host NumPy glue.
# ----------------------------------------------------------------------------
def get_target_np(targets, scaled_anchors, in_w, in_h, num_anchors,
                  ignore_threshold):
    bs = len(targets)
    A = num_anchors
    anc = np.asarray(scaled_anchors, dtype=np.float32)          # (A, 2)

    obj_mask = np.zeros((bs, A, in_h, in_w), np.float32)
    noobj_mask = np.ones((bs, A, in_h, in_w), np.float32)
    tx = np.zeros((bs, A, in_h, in_w), np.float32)
    ty = np.zeros((bs, A, in_h, in_w), np.float32)
    tw = np.zeros((bs, A, in_h, in_w), np.float32)
    th = np.zeros((bs, A, in_h, in_w), np.float32)
    cls_id = np.zeros((bs, A, in_h, in_w), np.float32)
    box_loss_scale = np.zeros((bs, A, in_h, in_w), np.float32)

    for b in range(bs):
        for t in range(targets[b].shape[0]):
            if targets[b][t].sum() == 0:
                continue
            gx = float(targets[b][t, 0]) * in_w
            gy = float(targets[b][t, 1]) * in_h
            gw = float(targets[b][t, 2]) * in_w
            gh = float(targets[b][t, 3]) * in_h
            gi = int(gx)
            gj = int(gy)
            inter = np.minimum(gw, anc[:, 0]) * np.minimum(gh, anc[:, 1])
            union = gw * gh + anc[:, 0] * anc[:, 1] - inter + 1e-16
            ious = inter / union
            noobj_mask[b, ious > ignore_threshold, gj, gi] = 0
            best_n = int(np.argmax(ious))
            obj_mask[b, best_n, gj, gi] = 1
            noobj_mask[b, best_n, gj, gi] = 0
            cls_id[b, best_n, gj, gi] = float(int(targets[b][t, 4]))
            tx[b, best_n, gj, gi] = gx - gi
            ty[b, best_n, gj, gi] = gy - gj
            tw[b, best_n, gj, gi] = math.log(gw / anc[best_n, 0] + 1e-16)
            th[b, best_n, gj, gi] = math.log(gh / anc[best_n, 1] + 1e-16)
            box_loss_scale[b, best_n, gj, gi] = 2 - gw / in_w * (gh / in_h)
    return obj_mask, noobj_mask, tx, ty, tw, th, cls_id, box_loss_scale


# ----------------------------------------------------------------------------
# Module wrapper
# ----------------------------------------------------------------------------
class YOLOLossPallas:
    def __init__(self, anchors, num_classes, img_size):
        self.anchors = anchors
        self.num_anchors = len(anchors)
        self.num_classes = num_classes
        self.bbox_attrs = 5 + num_classes
        self.img_size = img_size
        self.ignore_threshold = 0.5
        self.lambda_xy = 2.5
        self.lambda_wh = 2.5
        self.lambda_conf = 1.0
        self.lambda_cls = 1.0
        self._vmem_limit = 48 * 1024 * 1024   # > v5e/v6e scoped defaults, < v7x VMEM

    def __call__(self, x, targets=None):
        bs, _, in_h, in_w = x.shape
        A, attrs = self.num_anchors, self.bbox_attrs
        HW = in_h * in_w
        N = bs * A
        stride_h = self.img_size[1] / in_h
        stride_w = self.img_size[0] / in_w
        scaled_anchors = [(aw / stride_w, ah / stride_h) for aw, ah in self.anchors]

        # NCHW -> (attrs, bs*A, HW): attrs is a cheap leading slab axis; (bs*A, HW)
        # fills the sublane/lane tile of every vector op inside the kernels.
        pred = jnp.transpose(
            jnp.asarray(x, jnp.float32).reshape(bs, A, attrs, HW),
            (2, 0, 1, 3)).reshape(attrs, N, HW)

        if targets is not None:
            return self._loss(pred, targets, scaled_anchors, bs, in_h, in_w)
        return self._decode(pred, scaled_anchors, bs, in_h, in_w,
                            stride_w, stride_h, HW)

    # ----- inference path -----
    def _decode(self, pred, scaled_anchors, bs, in_h, in_w,
                stride_w, stride_h, HW):
        A, C, attrs = self.num_anchors, self.num_classes, self.bbox_attrs
        N = bs * A

        per_lane = 2 * attrs * N * 4            # pred in + decoded out, per lane col
        hw_tile, hwp = _choose_tiles(HW, per_lane)
        if hwp != HW:
            pred = jnp.pad(pred, ((0, 0), (0, 0), (0, hwp - HW)))
        num_tiles = hwp // hw_tile

        # Anchors pre-multiplied by stride host-side (removes one broadcast
        # multiply per element for bw/bh inside the kernel).
        anc = (np.asarray(scaled_anchors, np.float32)
               * np.asarray([stride_w, stride_h], np.float32))       # (A, 2) pixels
        anc_nd = jnp.asarray(
            np.stack([np.tile(anc[:, 0], bs), np.tile(anc[:, 1], bs)],
                     axis=0).reshape(2, N, 1))

        kernel = functools.partial(_decode_kernel, in_w=in_w,
                                   stride_w=float(stride_w),
                                   stride_h=float(stride_h),
                                   num_classes=C)
        cost = pl.CostEstimate(
            flops=int(10 * attrs * N * hwp),
            transcendentals=int((5 + C) * N * hwp),
            bytes_accessed=int(4 * (2 * attrs * N * hwp + 2 * N)))

        decoded = pl.pallas_call(
            kernel,
            out_shape=jax.ShapeDtypeStruct((attrs, N, hwp), jnp.float32),
            grid_spec=pltpu.PrefetchScalarGridSpec(
                num_scalar_prefetch=0,
                grid=(num_tiles,),
                in_specs=[
                    pl.BlockSpec((attrs, N, hw_tile), lambda g: (0, 0, g)),
                    pl.BlockSpec((2, N, 1), lambda g: (0, 0, 0)),
                ],
                out_specs=pl.BlockSpec((attrs, N, hw_tile), lambda g: (0, 0, g)),
            ),
            compiler_params=pltpu.CompilerParams(
                dimension_semantics=("parallel",),
                vmem_limit_bytes=self._vmem_limit),
            cost_estimate=cost,
        )(pred, anc_nd)

        decoded = decoded[:, :, :HW]
        # Kernel output stays lane-dense; the torch-ordered (bs, A*HW, attrs) view
        # is produced by one XLA relayout here.
        # TODO(synk): if the consumer can take the (attrs, bs*A, HW) layout, drop
        #             this transpose and save a full HBM round trip.
        out = decoded.reshape(attrs, bs, A, HW).transpose(1, 2, 3, 0).reshape(
            bs, A * HW, attrs)
        return out

    # ----- training path -----
    def _loss(self, pred, targets, scaled_anchors, bs, in_h, in_w):
        A, C, attrs = self.num_anchors, self.num_classes, self.bbox_attrs
        HW = in_h * in_w
        N = bs * A

        (obj, noobj, tx, ty, tw, th, cls_id, bls) = get_target_np(
            targets, scaled_anchors, in_w, in_h, A, self.ignore_threshold)

        # n_obj / n_noobj are static per call -> computed host-side (drops two
        # kernel output rows).  max(.,1) guards the degenerate zero-object case
        # (torch reference would produce NaN there).
        n_obj = float(max(obj.sum(), 1.0))
        n_noobj = float(max(noobj.sum(), 1.0))

        # 8 target channels in one array (one fat DMA per step); the dense one-hot
        # tcls is replaced by the class-id channel.
        tgt = np.stack([obj, noobj, tx, ty, tw, th, bls, cls_id],
                       axis=0).reshape(8, N, HW)

        per_lane = (attrs + 8) * N * 4 + 7 * 4
        hw_tile, hwp = _choose_tiles(HW, per_lane)
        pad = hwp - HW
        if pad:
            # zero padding => mask == noobj == 0 on padded lanes -> no contribution
            pred = jnp.pad(pred, ((0, 0), (0, 0), (0, pad)))
            tgt = np.pad(tgt, ((0, 0), (0, 0), (0, pad)))
        tgt_j = jnp.asarray(tgt, jnp.float32)
        num_tiles = hwp // hw_tile

        cost = pl.CostEstimate(
            flops=int((30 + 10 * C) * N * hwp),
            transcendentals=int(2 * (3 + C) * N * hwp),
            bytes_accessed=int(4 * ((attrs + 8) * N * hwp + 7 * hwp)))

        partial = pl.pallas_call(
            functools.partial(_loss_kernel, num_classes=C),
            out_shape=jax.ShapeDtypeStruct((7, hwp), jnp.float32),
            grid_spec=pltpu.PrefetchScalarGridSpec(
                num_scalar_prefetch=0,
                grid=(num_tiles,),
                in_specs=[
                    pl.BlockSpec((attrs, N, hw_tile), lambda g: (0, 0, g)),
                    pl.BlockSpec((8, N, hw_tile), lambda g: (0, 0, g)),
                ],
                out_specs=pl.BlockSpec((7, hw_tile), lambda g: (0, g)),
            ),
            compiler_params=pltpu.CompilerParams(
                dimension_semantics=("parallel",),
                vmem_limit_bytes=self._vmem_limit),
            cost_estimate=cost,
        )(pred, tgt_j)

        # Tiny epilogue: combine per-tile partial sums with the torch means.
        s = jnp.sum(partial, axis=1)                        # (7,)
        loss = ((self.lambda_xy * (s[0] + s[1])
                 + self.lambda_wh * (s[2] + s[3])) / n_obj
                + self.lambda_conf * (s[4] / n_obj + s[5] / n_noobj)
                + self.lambda_cls * s[6] / (n_obj * C))
        return loss


if __name__ == "__main__":
    key = jax.random.PRNGKey(0)
    bs, A, C, H, W = 2, 3, 4, 16, 16
    anchors = [(10, 13), (16, 30), (33, 23)]
    img_size = (64, 64)

    x = jax.random.normal(key, (bs, A * (5 + C), H, W), dtype=jnp.float32)

    # deterministic synthetic targets: [cx, cy, w, h, class] normalized to [0,1]
    targets = [
        np.array([[0.30, 0.40, 0.20, 0.25, 1.0],
                  [0.65, 0.70, 0.35, 0.30, 3.0]], dtype=np.float32),
        np.array([[0.50, 0.55, 0.15, 0.40, 0.0]], dtype=np.float32),
    ]

    model = YOLOLossPallas(anchors=anchors, num_classes=C, img_size=img_size)

    loss = model(x, targets)          # training path (scalar loss)
    det = model(x, None)              # inference path (decoded boxes)
    jax.block_until_ready((loss, det))

    assert np.isfinite(float(loss))
    assert det.shape == (bs, A * H * W, 5 + C)
    print("KERNEL_OK")
</pallas_src>

<mosaic_0001>
module attributes {stable_mosaic.version = 11 : i64} {
  func.func @_loss_kernel(%arg0: i32, %arg1: memref<9x6x128xf32, #tpu.memory_space<vmem>>, %arg2: memref<8x6x128xf32, #tpu.memory_space<vmem>>, %arg3: memref<7x128xf32, #tpu.memory_space<vmem>>) attributes {dimension_semantics = [#tpu.dimension_semantics<parallel>], iteration_bounds = array<i64: 2>, scalar_prefetch = 0 : i64, scratch_operands = 0 : i64, tpu.core_type = #tpu.core_type<tc>, window_params = [{transform_indices = @transform_0, window_bounds = array<i64: 9, 6, 128>}, {transform_indices = @transform_1, window_bounds = array<i64: 8, 6, 128>}, {transform_indices = @transform_2, window_bounds = array<i64: 7, 128>}]} {
    %c0 = arith.constant 0 : index
    %c0_0 = arith.constant 0 : index
    %c0_1 = arith.constant 0 : index
    %0 = vector.load %arg2[%c0, %c0_0, %c0_1] : memref<8x6x128xf32, #tpu.memory_space<vmem>>, vector<1x6x128xf32>
    %1 = vector.shape_cast %0 : vector<1x6x128xf32> to vector<6x128xf32>
    %c1 = arith.constant 1 : index
    %c0_2 = arith.constant 0 : index
    %c0_3 = arith.constant 0 : index
    %2 = vector.load %arg2[%c1, %c0_2, %c0_3] : memref<8x6x128xf32, #tpu.memory_space<vmem>>, vector<1x6x128xf32>
    %3 = vector.shape_cast %2 : vector<1x6x128xf32> to vector<6x128xf32>
    %c2 = arith.constant 2 : index
    %c0_4 = arith.constant 0 : index
    %c0_5 = arith.constant 0 : index
    %4 = vector.load %arg2[%c2, %c0_4, %c0_5] : memref<8x6x128xf32, #tpu.memory_space<vmem>>, vector<1x6x128xf32>
    %5 = vector.shape_cast %4 : vector<1x6x128xf32> to vector<6x128xf32>
    %c3 = arith.constant 3 : index
    %c0_6 = arith.constant 0 : index
    %c0_7 = arith.constant 0 : index
    %6 = vector.load %arg2[%c3, %c0_6, %c0_7] : memref<8x6x128xf32, #tpu.memory_space<vmem>>, vector<1x6x128xf32>
    %7 = vector.shape_cast %6 : vector<1x6x128xf32> to vector<6x128xf32>
    %c4 = arith.constant 4 : index
    %c0_8 = arith.constant 0 : index
    %c0_9 = arith.constant 0 : index
    %8 = vector.load %arg2[%c4, %c0_8, %c0_9] : memref<8x6x128xf32, #tpu.memory_space<vmem>>, vector<1x6x128xf32>
    %9 = vector.shape_cast %8 : vector<1x6x128xf32> to vector<6x128xf32>
    %c5 = arith.constant 5 : index
    %c0_10 = arith.constant 0 : index
    %c0_11 = arith.constant 0 : index
    %10 = vector.load %arg2[%c5, %c0_10, %c0_11] : memref<8x6x128xf32, #tpu.memory_space<vmem>>, vector<1x6x128xf32>
    %11 = vector.shape_cast %10 : vector<1x6x128xf32> to vector<6x128xf32>
    %c6 = arith.constant 6 : index
    %c0_12 = arith.constant 0 : index
    %c0_13 = arith.constant 0 : index
    %12 = vector.load %arg2[%c6, %c0_12, %c0_13] : memref<8x6x128xf32, #tpu.memory_space<vmem>>, vector<1x6x128xf32>
    %13 = vector.shape_cast %12 : vector<1x6x128xf32> to vector<6x128xf32>
    %c7 = arith.constant 7 : index
    %c0_14 = arith.constant 0 : index
    %c0_15 = arith.constant 0 : index
    %14 = vector.load %arg2[%c7, %c0_14, %c0_15] : memref<8x6x128xf32, #tpu.memory_space<vmem>>, vector<1x6x128xf32>
    %15 = vector.shape_cast %14 : vector<1x6x128xf32> to vector<6x128xf32>
    %16 = arith.mulf %1, %13 : vector<6x128xf32>
    %c0_16 = arith.constant 0 : index
    %c0_17 = arith.constant 0 : index
    %c0_18 = arith.constant 0 : index
    %17 = vector.load %arg1[%c0_16, %c0_17, %c0_18] : memref<9x6x128xf32, #tpu.memory_space<vmem>>, vector<1x6x128xf32>
    %18 = vector.shape_cast %17 : vector<1x6x128xf32> to vector<6x128xf32>
    %c1_19 = arith.constant 1 : index
    %c0_20 = arith.constant 0 : index
    %c0_21 = arith.constant 0 : index
    %19 = vector.load %arg1[%c1_19, %c0_20, %c0_21] : memref<9x6x128xf32, #tpu.memory_space<vmem>>, vector<1x6x128xf32>
    %20 = vector.shape_cast %19 : vector<1x6x128xf32> to vector<6x128xf32>
    %c2_22 = arith.constant 2 : index
    %c0_23 = arith.constant 0 : index
    %c0_24 = arith.constant 0 : index
    %21 = vector.load %arg1[%c2_22, %c0_23, %c0_24] : memref<9x6x128xf32, #tpu.memory_space<vmem>>, vector<1x6x128xf32>
    %22 = vector.shape_cast %21 : vector<1x6x128xf32> to vector<6x128xf32>
    %c3_25 = arith.constant 3 : index
    %c0_26 = arith.constant 0 : index
    %c0_27 = arith.constant 0 : index
    %23 = vector.load %arg1[%c3_25, %c0_26, %c0_27] : memref<9x6x128xf32, #tpu.memory_space<vmem>>, vector<1x6x128xf32>
    %24 = vector.shape_cast %23 : vector<1x6x128xf32> to vector<6x128xf32>
    %c4_28 = arith.constant 4 : index
    %c0_29 = arith.constant 0 : index
    %c0_30 = arith.constant 0 : index
    %25 = vector.load %arg1[%c4_28, %c0_29, %c0_30] : memref<9x6x128xf32, #tpu.memory_space<vmem>>, vector<1x6x128xf32>
    %26 = vector.shape_cast %25 : vector<1x6x128xf32> to vector<6x128xf32>
    %cst = arith.constant -16.1180954 : f32
    %cst_31 = arith.constant 16.1180954 : f32
    %27 = vector.broadcast %cst : f32 to vector<6x128xf32>
    %28 = arith.maximumf %27, %26 : vector<6x128xf32>
    %29 = vector.broadcast %cst_31 : f32 to vector<6x128xf32>
    %30 = arith.minimumf %29, %28 : vector<6x128xf32>
    %cst_32 = arith.constant 0.000000e+00 : f32
    %31 = vector.broadcast %cst_32 : f32 to vector<6x128xf32>
    %32 = arith.maximumf %30, %31 : vector<6x128xf32>
    %33 = math.absf %30 : vector<6x128xf32>
    %cst_33 = arith.constant 0.000000e+00 : f32
    %34 = vector.broadcast %cst_33 : f32 to vector<6x128xf32>
    %35 = arith.subf %34, %33 : vector<6x128xf32>
    %36 = math.exp %35 : vector<6x128xf32>
    %cst_34 = arith.constant 1.000000e+00 : f32
    %37 = vector.broadcast %cst_34 : f32 to vector<6x128xf32>
    %38 = arith.addf %37, %36 : vector<6x128xf32>
    %39 = math.log %38 : vector<6x128xf32>
    %40 = arith.addf %32, %39 : vector<6x128xf32>
    %cst_35 = arith.constant -16.1180954 : f32
    %cst_36 = arith.constant 16.1180954 : f32
    %41 = vector.broadcast %cst_35 : f32 to vector<6x128xf32>
    %42 = arith.maximumf %41, %18 : vector<6x128xf32>
    %43 = vector.broadcast %cst_36 : f32 to vector<6x128xf32>
    %44 = arith.minimumf %43, %42 : vector<6x128xf32>
    %cst_37 = arith.constant 0.000000e+00 : f32
    %45 = vector.broadcast %cst_37 : f32 to vector<6x128xf32>
    %46 = arith.maximumf %44, %45 : vector<6x128xf32>
    %47 = math.absf %44 : vector<6x128xf32>
    %cst_38 = arith.constant 0.000000e+00 : f32
    %48 = vector.broadcast %cst_38 : f32 to vector<6x128xf32>
    %49 = arith.subf %48, %47 : vector<6x128xf32>
    %50 = math.exp %49 : vector<6x128xf32>
    %cst_39 = arith.constant 1.000000e+00 : f32
    %51 = vector.broadcast %cst_39 : f32 to vector<6x128xf32>
    %52 = arith.addf %51, %50 : vector<6x128xf32>
    %53 = math.log %52 : vector<6x128xf32>
    %54 = arith.addf %46, %53 : vector<6x128xf32>
    %55 = arith.mulf %5, %44 : vector<6x128xf32>
    %56 = arith.subf %54, %55 : vector<6x128xf32>
    %57 = arith.mulf %16, %56 : vector<6x128xf32>
    %cst_40 = arith.constant dense<0.000000e+00> : vector<128xf32>
    %58 = vector.multi_reduction <add>, %57, %cst_40 [0] : vector<6x128xf32> to vector<128xf32>
    %c0_41 = arith.constant 0 : index
    %c0_42 = arith.constant 0 : index
    %59 = vector.load %arg3[%c0_41, %c0_42] : memref<7x128xf32, #tpu.memory_space<vmem>>, vector<1x128xf32>
    %60 = vector.shape_cast %59 : vector<1x128xf32> to vector<128xf32>
    %61 = vector.shape_cast %58 : vector<128xf32> to vector<1x128xf32>
    tpu.vector_store %arg3[%c0_41, %c0_42], %61 {strides = array<i32>} : memref<7x128xf32, #tpu.memory_space<vmem>>, vector<1x128xf32>,
    %cst_43 = arith.constant -16.1180954 : f32
    %cst_44 = arith.constant 16.1180954 : f32
    %62 = vector.broadcast %cst_43 : f32 to vector<6x128xf32>
    %63 = arith.maximumf %62, %20 : vector<6x128xf32>
    %64 = vector.broadcast %cst_44 : f32 to vector<6x128xf32>
    %65 = arith.minimumf %64, %63 : vector<6x128xf32>
    %cst_45 = arith.constant 0.000000e+00 : f32
    %66 = vector.broadcast %cst_45 : f32 to vector<6x128xf32>
    %67 = arith.maximumf %65, %66 : vector<6x128xf32>
    %68 = math.absf %65 : vector<6x128xf32>
    %cst_46 = arith.constant 0.000000e+00 : f32
    %69 = vector.broadcast %cst_46 : f32 to vector<6x128xf32>
    %70 = arith.subf %69, %68 : vector<6x128xf32>
    %71 = math.exp %70 : vector<6x128xf32>
    %cst_47 = arith.constant 1.000000e+00 : f32
    %72 = vector.broadcast %cst_47 : f32 to vector<6x128xf32>
    %73 = arith.addf %72, %71 : vector<6x128xf32>
    %74 = math.log %73 : vector<6x128xf32>
    %75 = arith.addf %67, %74 : vector<6x128xf32>
    %76 = arith.mulf %7, %65 : vector<6x128xf32>
    %77 = arith.subf %75, %76 : vector<6x128xf32>
    %78 = arith.mulf %16, %77 : vector<6x128xf32>
    %cst_48 = arith.constant dense<0.000000e+00> : vector<128xf32>
    %79 = vector.multi_reduction <add>, %78, %cst_48 [0] : vector<6x128xf32> to vector<128xf32>
    %c1_49 = arith.constant 1 : index
    %c0_50 = arith.constant 0 : index
    %80 = vector.load %arg3[%c1_49, %c0_50] : memref<7x128xf32, #tpu.memory_space<vmem>>, vector<1x128xf32>
    %81 = vector.shape_cast %80 : vector<1x128xf32> to vector<128xf32>
    %82 = vector.shape_cast %79 : vector<128xf32> to vector<1x128xf32>
    tpu.vector_store %arg3[%c1_49, %c0_50], %82 {strides = array<i32>} : memref<7x128xf32, #tpu.memory_space<vmem>>, vector<1x128xf32>,
    %83 = arith.subf %22, %9 : vector<6x128xf32>
    %84 = arith.mulf %83, %83 : vector<6x128xf32>
    %85 = arith.mulf %16, %84 : vector<6x128xf32>
    %cst_51 = arith.constant dense<0.000000e+00> : vector<128xf32>
    %86 = vector.multi_reduction <add>, %85, %cst_51 [0] : vector<6x128xf32> to vector<128xf32>
    %c2_52 = arith.constant 2 : index
    %c0_53 = arith.constant 0 : index
    %87 = vector.load %arg3[%c2_52, %c0_53] : memref<7x128xf32, #tpu.memory_space<vmem>>, vector<1x128xf32>
    %88 = vector.shape_cast %87 : vector<1x128xf32> to vector<128xf32>
    %89 = vector.shape_cast %86 : vector<128xf32> to vector<1x128xf32>
    tpu.vector_store %arg3[%c2_52, %c0_53], %89 {strides = array<i32>} : memref<7x128xf32, #tpu.memory_space<vmem>>, vector<1x128xf32>,
    %90 = arith.subf %24, %11 : vector<6x128xf32>
    %91 = arith.mulf %90, %90 : vector<6x128xf32>
    %92 = arith.mulf %16, %91 : vector<6x128xf32>
    %cst_54 = arith.constant dense<0.000000e+00> : vector<128xf32>
    %93 = vector.multi_reduction <add>, %92, %cst_54 [0] : vector<6x128xf32> to vector<128xf32>
    %c3_55 = arith.constant 3 : index
    %c0_56 = arith.constant 0 : index
    %94 = vector.load %arg3[%c3_55, %c0_56] : memref<7x128xf32, #tpu.memory_space<vmem>>, vector<1x128xf32>
    %95 = vector.shape_cast %94 : vector<1x128xf32> to vector<128xf32>
    %96 = vector.shape_cast %93 : vector<128xf32> to vector<1x128xf32>
    tpu.vector_store %arg3[%c3_55, %c0_56], %96 {strides = array<i32>} : memref<7x128xf32, #tpu.memory_space<vmem>>, vector<1x128xf32>,
    %97 = arith.subf %40, %30 : vector<6x128xf32>
    %98 = arith.mulf %1, %97 : vector<6x128xf32>
    %cst_57 = arith.constant dense<0.000000e+00> : vector<128xf32>
    %99 = vector.multi_reduction <add>, %98, %cst_57 [0] : vector<6x128xf32> to vector<128xf32>
    %c4_58 = arith.constant 4 : index
    %c0_59 = arith.constant 0 : index
    %100 = vector.load %arg3[%c4_58, %c0_59] : memref<7x128xf32, #tpu.memory_space<vmem>>, vector<1x128xf32>
    %101 = vector.shape_cast %100 : vector<1x128xf32> to vector<128xf32>
    %102 = vector.shape_cast %99 : vector<128xf32> to vector<1x128xf32>
    tpu.vector_store %arg3[%c4_58, %c0_59], %102 {strides = array<i32>} : memref<7x128xf32, #tpu.memory_space<vmem>>, vector<1x128xf32>,
    %103 = arith.mulf %3, %40 : vector<6x128xf32>
    %cst_60 = arith.constant dense<0.000000e+00> : vector<128xf32>
    %104 = vector.multi_reduction <add>, %103, %cst_60 [0] : vector<6x128xf32> to vector<128xf32>
    %c5_61 = arith.constant 5 : index
    %c0_62 = arith.constant 0 : index
    %105 = vector.load %arg3[%c5_61, %c0_62] : memref<7x128xf32, #tpu.memory_space<vmem>>, vector<1x128xf32>
    %106 = vector.shape_cast %105 : vector<1x128xf32> to vector<128xf32>
    %107 = vector.shape_cast %104 : vector<128xf32> to vector<1x128xf32>
    tpu.vector_store %arg3[%c5_61, %c0_62], %107 {strides = array<i32>} : memref<7x128xf32, #tpu.memory_space<vmem>>, vector<1x128xf32>,
    %cst_63 = arith.constant 0.000000e+00 : f32
    %108 = vector.broadcast %cst_63 : f32 to vector<6x128xf32>
    %c5_64 = arith.constant 5 : index
    %c0_65 = arith.constant 0 : index
    %c0_66 = arith.constant 0 : index
    %109 = vector.load %arg1[%c5_64, %c0_65, %c0_66] : memref<9x6x128xf32, #tpu.memory_space<vmem>>, vector<1x6x128xf32>
    %110 = vector.shape_cast %109 : vector<1x6x128xf32> to vector<6x128xf32>
    %cst_67 = arith.constant -16.1180954 : f32
    %cst_68 = arith.constant 16.1180954 : f32
    %111 = vector.broadcast %cst_67 : f32 to vector<6x128xf32>
    %112 = arith.maximumf %111, %110 : vector<6x128xf32>
    %113 = vector.broadcast %cst_68 : f32 to vector<6x128xf32>
    %114 = arith.minimumf %113, %112 : vector<6x128xf32>
    %cst_69 = arith.constant 0.000000e+00 : f32
    %115 = vector.broadcast %cst_69 : f32 to vector<6x128xf32>
    %116 = arith.cmpf oeq, %15, %115 : vector<6x128xf32>
    %117 = arith.extui %116 : vector<6x128xi1> to vector<6x128xi32>
    %118 = arith.sitofp %117 : vector<6x128xi32> to vector<6x128xf32>
    %cst_70 = arith.constant 0.000000e+00 : f32
    %119 = vector.broadcast %cst_70 : f32 to vector<6x128xf32>
    %120 = arith.maximumf %114, %119 : vector<6x128xf32>
    %121 = math.absf %114 : vector<6x128xf32>
    %cst_71 = arith.constant 0.000000e+00 : f32
    %122 = vector.broadcast %cst_71 : f32 to vector<6x128xf32>
    %123 = arith.subf %122, %121 : vector<6x128xf32>
    %124 = math.exp %123 : vector<6x128xf32>
    %cst_72 = arith.constant 1.000000e+00 : f32
    %125 = vector.broadcast %cst_72 : f32 to vector<6x128xf32>
    %126 = arith.addf %125, %124 : vector<6x128xf32>
    %127 = math.log %126 : vector<6x128xf32>
    %128 = arith.addf %120, %127 : vector<6x128xf32>
    %129 = arith.mulf %118, %114 : vector<6x128xf32>
    %130 = arith.subf %128, %129 : vector<6x128xf32>
    %131 = arith.addf %108, %130 : vector<6x128xf32>
    %c6_73 = arith.constant 6 : index
    %c0_74 = arith.constant 0 : index
    %c0_75 = arith.constant 0 : index
    %132 = vector.load %arg1[%c6_73, %c0_74, %c0_75] : memref<9x6x128xf32, #tpu.memory_space<vmem>>, vector<1x6x128xf32>
    %133 = vector.shape_cast %132 : vector<1x6x128xf32> to vector<6x128xf32>
    %cst_76 = arith.constant -16.1180954 : f32
    %cst_77 = arith.constant 16.1180954 : f32
    %134 = vector.broadcast %cst_76 : f32 to vector<6x128xf32>
    %135 = arith.maximumf %134, %133 : vector<6x128xf32>
    %136 = vector.broadcast %cst_77 : f32 to vector<6x128xf32>
    %137 = arith.minimumf %136, %135 : vector<6x128xf32>
    %cst_78 = arith.constant 1.000000e+00 : f32
    %138 = vector.broadcast %cst_78 : f32 to vector<6x128xf32>
    %139 = arith.cmpf oeq, %15, %138 : vector<6x128xf32>
    %140 = arith.extui %139 : vector<6x128xi1> to vector<6x128xi32>
    %141 = arith.sitofp %140 : vector<6x128xi32> to vector<6x128xf32>
    %cst_79 = arith.constant 0.000000e+00 : f32
    %142 = vector.broadcast %cst_79 : f32 to vector<6x128xf32>
    %143 = arith.maximumf %137, %142 : vector<6x128xf32>
    %144 = math.absf %137 : vector<6x128xf32>
    %cst_80 = arith.constant 0.000000e+00 : f32
    %145 = vector.broadcast %cst_80 : f32 to vector<6x128xf32>
    %146 = arith.subf %145, %144 : vector<6x128xf32>
    %147 = math.exp %146 : vector<6x128xf32>
    %cst_81 = arith.constant 1.000000e+00 : f32
    %148 = vector.broadcast %cst_81 : f32 to vector<6x128xf32>
    %149 = arith.addf %148, %147 : vector<6x128xf32>
    %150 = math.log %149 : vector<6x128xf32>
    %151 = arith.addf %143, %150 : vector<6x128xf32>
    %152 = arith.mulf %141, %137 : vector<6x128xf32>
    %153 = arith.subf %151, %152 : vector<6x128xf32>
    %154 = arith.addf %131, %153 : vector<6x128xf32>
    %c7_82 = arith.constant 7 : index
    %c0_83 = arith.constant 0 : index
    %c0_84 = arith.constant 0 : index
    %155 = vector.load %arg1[%c7_82, %c0_83, %c0_84] : memref<9x6x128xf32, #tpu.memory_space<vmem>>, vector<1x6x128xf32>
    %156 = vector.shape_cast %155 : vector<1x6x128xf32> to vector<6x128xf32>
    %cst_85 = arith.constant -16.1180954 : f32
    %cst_86 = arith.constant 16.1180954 : f32
    %157 = vector.broadcast %cst_85 : f32 to vector<6x128xf32>
    %158 = arith.maximumf %157, %156 : vector<6x128xf32>
    %159 = vector.broadcast %cst_86 : f32 to vector<6x128xf32>
    %160 = arith.minimumf %159, %158 : vector<6x128xf32>
    %cst_87 = arith.constant 2.000000e+00 : f32
    %161 = vector.broadcast %cst_87 : f32 to vector<6x128xf32>
    %162 = arith.cmpf oeq, %15, %161 : vector<6x128xf32>
    %163 = arith.extui %162 : vector<6x128xi1> to vector<6x128xi32>
    %164 = arith.sitofp %163 : vector<6x128xi32> to vector<6x128xf32>
    %cst_88 = arith.constant 0.000000e+00 : f32
    %165 = vector.broadcast %cst_88 : f32 to vector<6x128xf32>
    %166 = arith.maximumf %160, %165 : vector<6x128xf32>
    %167 = math.absf %160 : vector<6x128xf32>
    %cst_89 = arith.constant 0.000000e+00 : f32
    %168 = vector.broadcast %cst_89 : f32 to vector<6x128xf32>
    %169 = arith.subf %168, %167 : vector<6x128xf32>
    %170 = math.exp %169 : vector<6x128xf32>
    %cst_90 = arith.constant 1.000000e+00 : f32
    %171 = vector.broadcast %cst_90 : f32 to vector<6x128xf32>
    %172 = arith.addf %171, %170 : vector<6x128xf32>
    %173 = math.log %172 : vector<6x128xf32>
    %174 = arith.addf %166, %173 : vector<6x128xf32>
    %175 = arith.mulf %164, %160 : vector<6x128xf32>
    %176 = arith.subf %174, %175 : vector<6x128xf32>
    %177 = arith.addf %154, %176 : vector<6x128xf32>
    %c8 = arith.constant 8 : index
    %c0_91 = arith.constant 0 : index
    %c0_92 = arith.constant 0 : index
    %178 = vector.load %arg1[%c8, %c0_91, %c0_92] : memref<9x6x128xf32, #tpu.memory_space<vmem>>, vector<1x6x128xf32>
    %179 = vector.shape_cast %178 : vector<1x6x128xf32> to vector<6x128xf32>
    %cst_93 = arith.constant -16.1180954 : f32
    %cst_94 = arith.constant 16.1180954 : f32
    %180 = vector.broadcast %cst_93 : f32 to vector<6x128xf32>
    %181 = arith.maximumf %180, %179 : vector<6x128xf32>
    %182 = vector.broadcast %cst_94 : f32 to vector<6x128xf32>
    %183 = arith.minimumf %182, %181 : vector<6x128xf32>
    %cst_95 = arith.constant 3.000000e+00 : f32
    %184 = vector.broadcast %cst_95 : f32 to vector<6x128xf32>
    %185 = arith.cmpf oeq, %15, %184 : vector<6x128xf32>
    %186 = arith.extui %185 : vector<6x128xi1> to vector<6x128xi32>
    %187 = arith.sitofp %186 : vector<6x128xi32> to vector<6x128xf32>
    %cst_96 = arith.constant 0.000000e+00 : f32
    %188 = vector.broadcast %cst_96 : f32 to vector<6x128xf32>
    %189 = arith.maximumf %183, %188 : vector<6x128xf32>
    %190 = math.absf %183 : vector<6x128xf32>
    %cst_97 = arith.constant 0.000000e+00 : f32
    %191 = vector.broadcast %cst_97 : f32 to vector<6x128xf32>
    %192 = arith.subf %191, %190 : vector<6x128xf32>
    %193 = math.exp %192 : vector<6x128xf32>
    %cst_98 = arith.constant 1.000000e+00 : f32
    %194 = vector.broadcast %cst_98 : f32 to vector<6x128xf32>
    %195 = arith.addf %194, %193 : vector<6x128xf32>
    %196 = math.log %195 : vector<6x128xf32>
    %197 = arith.addf %189, %196 : vector<6x128xf32>
    %198 = arith.mulf %187, %183 : vector<6x128xf32>
    %199 = arith.subf %197, %198 : vector<6x128xf32>
    %200 = arith.addf %177, %199 : vector<6x128xf32>
    %201 = arith.mulf %1, %200 : vector<6x128xf32>
    %cst_99 = arith.constant dense<0.000000e+00> : vector<128xf32>
    %202 = vector.multi_reduction <add>, %201, %cst_99 [0] : vector<6x128xf32> to vector<128xf32>
    %c6_100 = arith.constant 6 : index
    %c0_101 = arith.constant 0 : index
    %203 = vector.load %arg3[%c6_100, %c0_101] : memref<7x128xf32, #tpu.memory_space<vmem>>, vector<1x128xf32>
    %204 = vector.shape_cast %203 : vector<1x128xf32> to vector<128xf32>
    %205 = vector.shape_cast %202 : vector<128xf32> to vector<1x128xf32>
    tpu.vector_store %arg3[%c6_100, %c0_101], %205 {strides = array<i32>} : memref<7x128xf32, #tpu.memory_space<vmem>>, vector<1x128xf32>,
    return
  }
  func.func @transform_0(%arg0: i32) -> (i32, i32, i32) {
    %c0_i32 = arith.constant 0 : i32
    %c0_i32_0 = arith.constant 0 : i32
    %c0_i32_1 = arith.constant 0 : i32
    return %c0_i32, %c0_i32_0, %arg0 : i32, i32, i32
  }
  func.func @transform_1(%arg0: i32) -> (i32, i32, i32) {
    %c0_i32 = arith.constant 0 : i32
    %c0_i32_0 = arith.constant 0 : i32
    %c0_i32_1 = arith.constant 0 : i32
    return %c0_i32, %c0_i32_0, %arg0 : i32, i32, i32
  }
  func.func @transform_2(%arg0: i32) -> (i32, i32) {
    %c0_i32 = arith.constant 0 : i32
    %c0_i32_0 = arith.constant 0 : i32
    return %c0_i32, %arg0 : i32, i32
  }
}

</mosaic_0001>

<bundles_post_ra>
// kernel: tpu_custom_call.1
= control target key start
LH: loop header
LB: loop body
LE: loop exit
PB: predicated region body
PF: predicated region fallthrough
CT: control target
= control target key end

     0   :  { %7 = vsyncpa [#allocation5], 0  ;;  %s992_s0 = inlined_call_operand.vmem [shape: f32[9,6,256], index: 0, kind: input, shape index: {}]   ;;  %s993_s1 = inlined_call_operand.vmem [shape: f32[8,6,256], index: 1, kind: input, shape index: {}]   ;;  %s994_s2 = inlined_call_operand.hbm [shape: f32[7,256], index: 2, kind: output, shape index: {}]  }
   0x1   :  { %9 = vsyncpa [#allocation5 + $0x1], 0  ;;  %s784_s9 = smov 0   ;;  %s786_s10 = smov 0  }
   0x2   :  { %s788_s11 = smov 0   ;;  %s790_s12 = smov 0  }
   0x3 LB: > { %s593_s13 = sadd.s32 4294967295, %s765_s12   ;;  %s594_s14 = sadd.s32 4294967294, %s765_s12   ;;  %s765_s12 = sphi %s790_s12, %s1001_s12   ;;  %s761_s11 = sphi %s788_s11, %s1000_s11   ;;  %s757_s10 = sphi %s786_s10, %s999_s10   ;;  %s753_s9 = sphi %s784_s9, %s998_s9  }
   0x4   : > { %s807_s15 = sadd.s32 1, %s765_s12   ;;  %s22_s16 = sadd.s32 1, %s761_s11 }
   0x5   : > { %s19_s17 = ssub.s32 %s765_s12, %s807_s15  ;;  %p29_p0 = scmp.ne.s32.totalorder %s761_s11, %s757_s10 }
   0x6   : > { %p20_p1 = scmp.eq.s32.totalorder %s19_s17, 0  ;;  %p30_p2 = scmp.eq.s32.totalorder %s765_s12, 0 }
   0x7   : > { %p85_p3 = scmp.eq.s32.totalorder %s593_s13, 1  ;;  %p90_p4 = scmp.ne.s32.totalorder %s757_s10, %s753_s9 }
   0x8   : > { %s820_s18 = scalar_select %p20_p1, %s761_s11, %s22_s16  }
   0x9   : > { %p822_p5 = por %p30_p2, %p29_p0  ;;  %p826_p6 = por %p85_p3, %p29_p0 }
   0xa   : > { %p91_p7 = scmp.eq.s32.totalorder %s594_s14, 1  ;;  %p596_p9 = scmp.ge.s32.totalorder %s765_s12, 2 }
   0xc   : > { %p830_p8 = por %p91_p7, %p90_p4  ;;  %107 = sbr.rel (%p596_p9) target bundleno = 36 (0x24), region = 16 }
  0x13   : > { %110 = sbr.rel (!%p822_p5) target bundleno = 28 (0x1c), region = 20  ;;  %s112_s22 = sand.u32 (%p822_p5), 1, %s761_s11  }
  0x14   : > { %s597_s23 = sshll.u32 (%p822_p5), %s765_s12, 3  ;;  %s633_s24 = smul.u32 (%p822_p5), 72, %s112_s22 }
  0x15   : > { %s116_s27 = scalar_lea.vmem (%p822_p5), %s992_s0, %s597_s23 }
  0x16   : > { %v160_v0 = vld [vmem:[%s116_s27] sm:$0xff] (%p822_p5)  ;;  %v162_v1 = vld [vmem:[%s116_s27 + $0x10] sm:$0xff] (%p822_p5)  ;;  %s114_s28 = scalar_lea.vmem (%p822_p5), [#allocation2], %s633_s24 }
  0x17   : > { %v164_v2 = vld [vmem:[%s116_s27 + $0x20] sm:$0xff] (%p822_p5)  ;;  %v166_v3 = vld [vmem:[%s116_s27 + $0x30] sm:$0xff] (%p822_p5)  ;;  %161 = vst [vmem:[%s114_s28] sm:$0xff] (%p822_p5), %v160_v0  ;;  %163 = vst [vmem:[%s114_s28 + $0x8] sm:$0xff] (%p822_p5), %v162_v1 }
  0x18   : > { %v168_v4 = vld [vmem:[%s116_s27 + $0x40] sm:$0xff] (%p822_p5)  ;;  %v170_v5 = vld [vmem:[%s116_s27 + $0x50] sm:$0xff] (%p822_p5)  ;;  %165 = vst [vmem:[%s114_s28 + $0x10] sm:$0xff] (%p822_p5), %v164_v2  ;;  %167 = vst [vmem:[%s114_s28 + $0x18] sm:$0xff] (%p822_p5), %v166_v3 }
  0x19   : > { %169 = vst [vmem:[%s114_s28 + $0x20] sm:$0xff] (%p822_p5), %v168_v4  ;;  %171 = vst [vmem:[%s114_s28 + $0x28] sm:$0xff] (%p822_p5), %v170_v5  ;;  %v172_v6 = vld [vmem:[%s116_s27 + $0x60] sm:$0xff] (%p822_p5)  ;;  %v174_v7 = vld [vmem:[%s116_s27 + $0x70] sm:$0xff] (%p822_p5) }
  0x1a   : > { %v176_v8 = vld [vmem:[%s116_s27 + $0x80] sm:$0xff]  ;;  %173 = vst [vmem:[%s114_s28 + $0x30] sm:$0xff] %v172_v6  ;;  %175 = vst [vmem:[%s114_s28 + $0x38] sm:$0xff] %v174_v7 }
  0x1b   : > { %177 = vst [vmem:[%s114_s28 + $0x40] sm:$0xff] %v176_v8 }
  0x1c PF: > { %183 = sbr.rel (!%p822_p5) target bundleno = 36 (0x24), region = 58  ;;  %s185_s29 = sand.u32 (%p822_p5), 1, %s761_s11  }
  0x1d   : > { %s599_s30 = sshll.u32 (%p822_p5), %s765_s12, 3  ;;  %s598_s3 = sshll.u32 (%p822_p5), %s185_s29, 6 }
  0x1e   : > { %s189_s6 = scalar_lea.vmem (%p822_p5), %s993_s1, %s599_s30  ;;  %s187_s7 = scalar_lea.vmem (%p822_p5), [#allocation3], %s598_s3 }
  0x1f   : > { %v231_v9 = vld [vmem:[%s189_s6] sm:$0xff] (%p822_p5)  ;;  %v233_v10 = vld [vmem:[%s189_s6 + $0x10] sm:$0xff] (%p822_p5) }
  0x20   : > { %v235_v11 = vld [vmem:[%s189_s6 + $0x20] sm:$0xff] (%p822_p5)  ;;  %232 = vst [vmem:[%s187_s7] sm:$0xff] (%p822_p5), %v231_v9  ;;  %234 = vst [vmem:[%s187_s7 + $0x8] sm:$0xff] (%p822_p5), %v233_v10  ;;  %v237_v12 = vld [vmem:[%s189_s6 + $0x30] sm:$0xff] (%p822_p5) }
  0x21   : > { %236 = vst [vmem:[%s187_s7 + $0x10] sm:$0xff] (%p822_p5), %v235_v11  ;;  %v239_v13 = vld [vmem:[%s189_s6 + $0x40] sm:$0xff] (%p822_p5)  ;;  %v241_v14 = vld [vmem:[%s189_s6 + $0x50] sm:$0xff] (%p822_p5)  ;;  %238 = vst [vmem:[%s187_s7 + $0x18] sm:$0xff] (%p822_p5), %v237_v12 }
  0x22   : > { %240 = vst [vmem:[%s187_s7 + $0x20] sm:$0xff] (%p822_p5), %v239_v13  ;;  %242 = vst [vmem:[%s187_s7 + $0x28] sm:$0xff] (%p822_p5), %v241_v14  ;;  %v243_v15 = vld [vmem:[%s189_s6 + $0x60] sm:$0xff] (%p822_p5)  ;;  %v245_v16 = vld [vmem:[%s189_s6 + $0x70] sm:$0xff] (%p822_p5) }
  0x23   : > { %244 = vst [vmem:[%s187_s7 + $0x30] sm:$0xff] %v243_v15  ;;  %246 = vst [vmem:[%s187_s7 + $0x38] sm:$0xff] %v245_v16 }
  0x24 PF: > { %p600_p10 = scmp.ge.s32.totalorder %s765_s12, 1  ;;  %p251_p11 = scmp.lt.s32.totalorder %s765_s12, 3 }
  0x26   : > { %p252_p12 = pnand %p600_p10, %p251_p11 }
  0x27   : > { %s854_s8 = sand.u32 (!%p252_p12), 1, %s757_s10   ;;  %vm340_vm0 = vcmask (!%p252_p12), 1045504   ;;  %s630_s24 = sshll.u32 (!%p252_p12), %s593_s13, 7 }
  0x28   : > { %255 = sbr.rel (%p252_p12) target bundleno = 131 (0x83), region = 96  ;;  %s601_s16 = sshll.u32 (!%p252_p12), %s854_s8, 6 }
  0x29   : > { %s634_s14 = smul.u32 (!%p252_p12), 72, %s854_s8  ;;  %s858_s17 = scalar_lea.vmem (!%p252_p12), [#allocation3], %s601_s16 }
  0x2a   : > { %v861_v17 = vld [vmem:[%s858_s17] sm:$0x3f] (!%p252_p12)  ;;  %v608_v18 = vld [vmem:[%s858_s17 + $0x30] sm:$0x3f] (!%p252_p12)  ;;  %v607_v28 = vld [vmem:[%s858_s17 + $0x28] sm:$0x3f] (!%p252_p12)  ;;  %s947_s28 = scalar_lea.hbm (!%p252_p12), %s994_s2, %s630_s24 }
  0x2b   : > { %s864_s19 = scalar_lea.vmem (!%p252_p12), [#allocation2], %s634_s14  ;;  %v606_v23 = vld [vmem:[%s858_s17 + $0x20] sm:$0x3f] (!%p252_p12)  ;;  %v875_v25 = vmul.f32 (!%p252_p12), %v608_v18, %v861_v17  ;;  %s602_s22 = sshll.u32 (!%p252_p12), %s854_s8, 3 }
  0x2c   : > { %v306_v19 = vld [vmem:[%s864_s19] sm:$0x3f] (!%p252_p12)  ;;  %v610_v21 = vld [vmem:[%s864_s19 + $0x8] sm:$0x3f] (!%p252_p12)  ;;  %v611_v24 = vld [vmem:[%s864_s19 + $0x10] sm:$0x3f] (!%p252_p12) }
  0x2d   : > { %v867_v20 = vclamps-f32 (!%p252_p12), %v306_v19, 16.118095  ;;  %v870_v22 = vclamps-f32 (!%p252_p12), %v610_v21, 16.118095  ;;  %v371_v27 = vsub.f32 (!%p252_p12), %v611_v24, %v606_v23  ;;  %v612_v30 = vld [vmem:[%s864_s19 + $0x18] sm:$0x3f] (!%p252_p12) }
  0x2e   : > { %v382_v33 = vsub.f32 (!%p252_p12), %v612_v30, %v607_v28  ;;  %v613_v34 = vld [vmem:[%s864_s19 + $0x20] sm:$0x3f] (!%p252_p12)  ;;  %v617_v40 = vld [vmem:[%s864_s19 + $0x28] sm:$0x3f] (!%p252_p12)  ;;  %v620_v46 = vld [vmem:[%s864_s19 + $0x30] sm:$0x3f] (!%p252_p12) }
  0x2f   : > { %v329_v26 = vand.u32 2147483647, %v867_v20  ;;  %v352_v29 = vand.u32 2147483647, %v870_v22  ;;  %v372_v32 = vmul.f32 %v371_v27, %v371_v27  ;;  %v882_v36 = vclamps-f32 %v613_v34, 16.118095 }
  0x30   : > { %v383_v39 = vmul.f32 %v382_v33, %v382_v33  ;;  %v889_v45 = vclamps-f32 %v617_v40, 16.118095  ;;  %v892_v49 = vclamps-f32 %v620_v46, 16.118095  ;;  %v623_v55 = vld [vmem:[%s864_s19 + $0x38] sm:$0x3f] }
  0x31   : > { %v330_v31 = vsub.f32 0.0, %v329_v26  ;;  %v353_v35 = vsub.f32 0.0, %v352_v29  ;;  %v373_v38 = vmul.f32 %v372_v32, %v875_v25  ;;  %v318_v42 = vand.u32 2147483647, %v882_v36  ;;  %v626_v58 = vld [vmem:[%s864_s19 + $0x40] sm:$0x3f] }
  0x32   : > { %v384_v44 = vmul.f32 %v383_v39, %v875_v25  ;;  %v420_v51 = vand.u32 2147483647, %v889_v45  ;;  %v439_v57 = vand.u32 2147483647, %v892_v49  ;;  %v899_v63 = vclamps-f32 %v623_v55, 16.118095 }
  0x33   : > { %v331_v37 = vmul.f32 1.442695, %v330_v31  ;;  %v354_v41 = vmul.f32 1.442695, %v353_v35  ;;  %v374_v43 = vsel %vm340_vm0, %v373_v38, 0.0  ;;  %v319_v48 = vsub.f32 0.0, %v318_v42 }
  0x34   : > { %v375_v47 = vrot.slane %v374_v43, 4  ;;  %v385_v50 = vsel %vm340_vm0, %v384_v44, 0.0  ;;  %v421_v56 = vsub.f32 0.0, %v420_v51  ;;  %v440_v62 = vsub.f32 0.0, %v439_v57  ;;  %s906_s23 = scalar_lea.vmem [#allocation4], %s602_s22  ;;  %s498_s29 = scalar_lea.sflag [#allocation5], %s854_s8 }
  0x35   : > { %675 = vpow2.f32 %v331_v37  ;;  %v386_v53 = vrot.slane %v385_v50, 4  ;;  %v320_v54 = vmul.f32 1.442695, %v319_v48  ;;  %v902_v2 = vclamps-f32 %v626_v58, 16.118095  ;;  %s511_s25 = sshll.u32 %s906_s23, 4  ;;  %s949_s25 = int_to_ptr.vmem [resolvable:$true] %s511_s25 }
  0x36   : > { %677 = vpow2.f32 %v354_v41  ;;  %v376_v52 = vadd.f32 %v375_v47, %v374_v43  ;;  %v422_v61 = vmul.f32 1.442695, %v421_v56  ;;  %v441_v3 = vmul.f32 1.442695, %v440_v62  ;;  %v604_v28 = vld [vmem:[%s858_s17 + $0x10] sm:$0x3f] }
  0x37   : > { %v387_v60 = vadd.f32 %v386_v53, %v385_v50  ;;  %679 = vpow2.f32 %v320_v54  ;;  %v458_v4 = vand.u32 2147483647, %v899_v63  ;;  %v477_v13 = vand.u32 2147483647, %v902_v2  ;;  %v605_v31 = vld [vmem:[%s858_s17 + $0x18] sm:$0x3f] }
  0x38   : > { %v377_v59 = vrot.slane %v376_v52, 2  ;;  %681 = vpow2.f32 %v422_v61  ;;  %v328_v30 = vmax.f32 %v867_v20, 0.0  ;;  %v609_v32 = vld [vmem:[%s858_s17 + $0x38] sm:$0x3f]  ;;  %v351_v34 = vmax.f32 %v870_v22, 0.0  ;;  %s703_s30 = scalar_lea.vmem %s949_s25, 128 }
  0x39   : > { %v388_v1 = vrot.slane %v387_v60, 2  ;;  %683 = vpow2.f32 %v441_v3  ;;  %v459_v8 = vsub.f32 0.0, %v458_v4  ;;  %v478_v18 = vsub.f32 0.0, %v477_v13  ;;  %v603_v56 = vld [vmem:[%s858_s17 + $0x8] sm:$0x3f]  ;;  %p704_p13 = scmp.ne.s32.totalorder %s949_s25, %s703_s30  ;;  %s768_s13 = smov [#allocation4]  }
  0x3a   : > { %v378_v0 = vadd.f32 %v377_v59, %v376_v52  ;;  %v337_v38 = vmul.f32 %v867_v20, %v604_v28  ;;  %v360_v41 = vmul.f32 %v870_v22, %v605_v31  ;;  %vm416_vm1 = vcmp.eq.f32.partialorder %v609_v32, 0.0  ;;  %s707_s3 = sshll.u32 %s768_s13, 4  ;;  %s708_s3 = int_to_ptr.vmem [resolvable:$false] %s707_s3 }
  0x3b   : > { %v389_v6 = vadd.f32 %v388_v1, %v387_v60  ;;  %v460_v15 = vmul.f32 1.442695, %v459_v8  ;;  %v479_v21 = vmul.f32 1.442695, %v478_v18  ;;  %vm435_vm2 = vcmp.eq.f32.partialorder %v609_v32, 1.0  ;;  %p705_p0 = pnand %p704_p13, %p826_p6  ;;  %s709_s4 = scalar_lea.vmem %s708_s3, 256 }
  0x3c   : > { %v379_v5 = vrot.slane %v378_v0, 1  ;;  %v317_v47 = vmax.f32 %v882_v36, 0.0  ;;  %v767_v51 = vmov 0.0   ;;  %v419_v57 = vmax.f32 %v889_v45, 0.0  ;;  %p710_p2 = scmp.lt.s32.totalorder %s949_s25, %s708_s3  ;;  %p711_p3 = scmp.lt.s32.totalorder %s709_s4, %s703_s30 }
  0x3d   : > { %v390_v12 = vrot.slane %v389_v6, 1  ;;  %v619_v52 = vsel %vm416_vm1, 1.0, %v767_v51  ;;  %v622_v55 = vsel %vm435_vm2, 1.0, %v767_v51  ;;  %v438_v62 = vmax.f32 %v892_v49, 0.0  ;;  %p706_p1 = pneg %p705_p0 }
  0x3e   : > { %v380_v11 = vadd.f32 %v379_v5, %v378_v0  ;;  %v428_v61 = vmul.f32 %v619_v52, %v889_v45  ;;  %v447_v3 = vmul.f32 %v622_v55, %v892_v49  ;;  %vm454_vm3 = vcmp.eq.f32.partialorder %v609_v32, 2.0  ;;  %p712_p4 = por %p711_p3, %p710_p2 }
  0x3f   : > { %v676_v7 = vpop.eup %675  ;;  %v391_v16 = vadd.f32 %v390_v12, %v389_v6  ;;  %vm473_vm4 = vcmp.eq.f32.partialorder %v609_v32, 3.0  ;;  %v625_v13 = vsel %vm454_vm3, 1.0, %v767_v51  ;;  %v476_v32 = vmax.f32 %v902_v2, 0.0 }
  0x40   : > { %v678_v9 = vpop.eup %677  ;;  %v333_v10 = vadd.f32 1.0, %v676_v7  ;;  %381 = vst [vmem:[%s906_s23 + $0x2] sm:$0x1] %v380_v11  ;;  %v466_v31 = vmul.f32 %v625_v13, %v899_v63  ;;  %p713_p5 = pnand %p712_p4, %p706_p1 }
  0x41   : > { %v356_v14 = vadd.f32 1.0, %v678_v9  ;;  %v680_v19 = vpop.eup %679  ;;  %392 = vst [vmem:[%s906_s23 + $0x3] sm:$0x1] %v391_v16  ;;  %v457_v16 = vmax.f32 %v899_v63, 0.0 }
  0x42   : > { %685 = vlog2.f32 %v333_v10  ;;  %v322_v23 = vadd.f32 1.0, %v680_v19  ;;  %v682_v24 = vpop.eup %681 }
  0x43   : > { %687 = vlog2.f32 %v356_v14  ;;  %v424_v26 = vadd.f32 1.0, %v682_v24  ;;  %v684_v27 = vpop.eup %683 }
  0x44   : > { %689 = vpow2.f32 %v460_v15  ;;  %v443_v29 = vadd.f32 1.0, %v684_v27 }
  0x45   : > { %691 = vpow2.f32 %v479_v21  ;;  %v628_v21 = vsel %vm473_vm4, 1.0, %v767_v51 }
  0x46   : > { %693 = vlog2.f32 %v322_v23 }
  0x47   : > { %695 = vlog2.f32 %v424_v26 }
  0x48   : > { %697 = vlog2.f32 %v443_v29 }
  0x4c   : > { %v686_v33 = vpop.eup %685 }
  0x4d   : > { %v688_v35 = vpop.eup %687  ;;  %v335_v37 = vmul.f32 0.6931472, %v686_v33 }
  0x4e   : > { %v690_v39 = vpop.eup %689  ;;  %v358_v40 = vmul.f32 0.6931472, %v688_v35 }
  0x4f   : > { %v336_v42 = vadd.f32 %v335_v37, %v328_v30  ;;  %v462_v43 = vadd.f32 1.0, %v690_v39  ;;  %v692_v44 = vpop.eup %691 }
  0x50   : > { %v359_v46 = vadd.f32 %v358_v40, %v351_v34  ;;  %v694_v48 = vpop.eup %693  ;;  %v481_v53 = vadd.f32 1.0, %v692_v44 }
  0x51   : > { %v338_v50 = vsub.f32 %v336_v42, %v337_v38  ;;  %699 = vlog2.f32 %v462_v43  ;;  %v324_v54 = vmul.f32 0.6931472, %v694_v48  ;;  %v696_v58 = vpop.eup %695  ;;  %v485_v38 = vmul.f32 %v628_v21, %v902_v2 }
  0x52   : > { %v361_v20 = vsub.f32 %v359_v46, %v360_v41  ;;  %701 = vlog2.f32 %v481_v53  ;;  %v426_v1 = vmul.f32 0.6931472, %v696_v58  ;;  %v698_v4 = vpop.eup %697 }
  0x53   : > { %v339_v22 = vmul.f32 %v338_v50, %v875_v25  ;;  %v325_v60 = vadd.f32 %v324_v54, %v317_v47  ;;  %v445_v10 = vmul.f32 0.6931472, %v698_v4 }
  0x54   : > { %v362_v59 = vmul.f32 %v361_v20, %v875_v25  ;;  %v427_v25 = vadd.f32 %v426_v1, %v419_v57 }
  0x55   : > { %v341_v0 = vsel %vm340_vm0, %v339_v22, 0.0  ;;  %v393_v7 = vsub.f32 %v325_v60, %v882_v36  ;;  %v403_v8 = vmul.f32 %v603_v56, %v325_v60  ;;  %v446_v15 = vadd.f32 %v445_v10, %v438_v62 }
  0x56   : > { %v342_v5 = vrot.slane %v341_v0, 4  ;;  %v363_v6 = vsel %vm340_vm0, %v362_v59, 0.0  ;;  %v429_v36 = vsub.f32 %v427_v25, %v428_v61 }
  0x57   : > { %v364_v9 = vrot.slane %v363_v6, 4  ;;  %v394_v11 = vmul.f32 %v393_v7, %v861_v17  ;;  %v404_v12 = vsel %vm340_vm0, %v403_v8, 0.0  ;;  %v448_v28 = vsub.f32 %v446_v15, %v447_v3 }
  0x58   : > { %v343_v45 = vadd.f32 %v342_v5, %v341_v0  ;;  %v405_v49 = vrot.slane %v404_v12, 4 }
  0x59   : > { %v365_v14 = vadd.f32 %v364_v9, %v363_v6  ;;  %v395_v19 = vsel %vm340_vm0, %v394_v11, 0.0  ;;  %v449_v40 = vadd.f32 %v448_v28, %v429_v36 }
  0x5a   : > { %v344_v18 = vrot.slane %v343_v45, 2  ;;  %v396_v26 = vrot.slane %v395_v19, 4  ;;  %v406_v27 = vadd.f32 %v405_v49, %v404_v12 }
  0x5b   : > { %v700_v23 = vpop.eup %699  ;;  %v366_v24 = vrot.slane %v365_v14, 2 }
  0x5c   : > { %v345_v29 = vadd.f32 %v344_v18, %v343_v45  ;;  %v464_v30 = vmul.f32 0.6931472, %v700_v23  ;;  %v702_v33 = vpop.eup %701  ;;  %v397_v35 = vadd.f32 %v396_v26, %v395_v19  ;;  %v407_v37 = vrot.slane %v406_v27, 2 }
  0x5d   : > { %v367_v34 = vadd.f32 %v366_v24, %v365_v14  ;;  %v483_v42 = vmul.f32 0.6931472, %v702_v33 }
  0x5e   : > { %v346_v39 = vrot.slane %v345_v29, 1  ;;  %v465_v41 = vadd.f32 %v464_v30, %v457_v16  ;;  %v398_v44 = vrot.slane %v397_v35, 2  ;;  %v408_v46 = vadd.f32 %v407_v37, %v406_v27 }
  0x5f   : > { %v368_v43 = vrot.slane %v367_v34, 1  ;;  %v484_v48 = vadd.f32 %v483_v42, %v476_v32 }
  0x60   : > { %v347_v47 = vadd.f32 %v346_v39, %v345_v29  ;;  %v467_v63 = vsub.f32 %v465_v41, %v466_v31  ;;  %v399_v51 = vadd.f32 %v398_v44, %v397_v35  ;;  %v409_v52 = vrot.slane %v408_v46, 1 }
  0x61   : > { %v369_v50 = vadd.f32 %v368_v43, %v367_v34  ;;  %v486_v2 = vsub.f32 %v484_v48, %v485_v38 }
  0x62   : > { %348 = vst [vmem:[%s906_s23] sm:$0x1] %v347_v47  ;;  %v468_v53 = vadd.f32 %v467_v63, %v449_v40  ;;  %v400_v20 = vrot.slane %v399_v51, 1  ;;  %v410_v54 = vadd.f32 %v409_v52, %v408_v46 }
  0x63   : > { %370 = vst [vmem:[%s906_s23 + $0x1] sm:$0x1] %v369_v50 }
  0x64   : > { %v487_v55 = vadd.f32 %v486_v2, %v468_v53  ;;  %v401_v22 = vadd.f32 %v400_v20, %v399_v51  ;;  %411 = vst [vmem:[%s906_s23 + $0x5] sm:$0x1] %v410_v54 }
  0x66   : > { %v488_v56 = vmul.f32 %v487_v55, %v861_v17  ;;  %402 = vst [vmem:[%s906_s23 + $0x4] sm:$0x1] %v401_v22 }
  0x68   : > { %v489_v57 = vsel %vm340_vm0, %v488_v56, 0.0 }
  0x69   : > { %v490_v58 = vrot.slane %v489_v57, 4 }
  0x6b   : > { %v491_v59 = vadd.f32 %v490_v58, %v489_v57 }
  0x6d   : > { %v492_v60 = vrot.slane %v491_v59, 2 }
  0x6f   : > { %v493_v61 = vadd.f32 %v492_v60, %v491_v59 }
  0x71   : > { %v494_v62 = vrot.slane %v493_v61, 1 }
  0x73   : > { %v495_v0 = vadd.f32 %v494_v62, %v493_v61 }
  0x75   : > { %496 = vst [vmem:[%s906_s23 + $0x6] sm:$0x1] %v495_v0 }
  0x76   : > { %716 = shalt.err (!%p713_p5)
}
  0x77   : > { %s717_s5 = scalar_lea.hbm %s947_s28, 128  ;;  %s721_s8 = scalar_lea.hbm %s994_s2, 256 }
  0x78   : > { %p718_p7 = scmp.ne.s32.totalorder %s947_s28, %s717_s5  ;;  %p722_p12 = scmp.lt.u32.totalorder %s947_s28, %s994_s2 }
  0x79   : > { %p723_p13 = scmp.lt.u32.totalorder %s721_s8, %s717_s5  ;;  %p725_p1 = scmp.lt.u32.totalorder %s717_s5, %s947_s28 }
  0x7a   : > { %p719_p10 = pnand %p718_p7, %p826_p6 }
  0x7b   : > { %p724_p0 = por %p723_p13, %p722_p12 }
  0x7c   : > { %p720_p11 = pneg %p719_p10 }
  0x7d   : > { %p726_p2 = por %p725_p1, %p724_p0 }
  0x7f   : > { %p727_p3 = pnand %p726_p2, %p720_p11 }
  0x81   : > { %730 = shalt.err (!%p727_p3)
}
  0x82   : > { %635 = dma.vmem_to_hbm [thread:$0]  (%p826_p6), %s949_s25, 128, %s947_s28, %s498_s29  }
  0x83 PF: > { %s523_s17 = sand.u32 1, %s753_s9   ;;  %p638_p4 = pnand %p596_p9, %p830_p8 }
  0x84   : > { %s524_s19 = scalar_lea.sflag [#allocation5], %s523_s17 }
  0x85   : > { %748 = dma.done.wait (!%p638_p4), %s524_s19, 128  }
  0x86   : > { %750 = vsyncadd (!%p638_p4), %s524_s19, 4294967168  ;;  %p12_p5 = scmp.ge.s32.totalorder %s807_s15, 4   ;;  %s998_s9 = smov %s757_s10 }
  0x87   : > { %s999_s10 = smov %s761_s11  ;;  %s1000_s11 = smov %s820_s18 }
  0x88   : > { %s1001_s12 = smov %s807_s15  ;;  %14 = sbr.rel (!%p12_p5) target bundleno = 3 (0x3), region = 167 }
  0x8f   :  { %529 = vsyncpa [#allocation5], 1 }
  0x90   :  { %531 = vsyncpa [#allocation5 + $0x1], 1 }

</bundles_post_ra>
